<compile_context>
chip_gen: v6e
topology: v6e:2x2x1
jax: 0.10.0
libtpu: 0.0.40
codegen_flags: <defaults>
</compile_context>

<pallas_src>
import functools
import math

import jax
import jax.numpy as jnp
from jax.experimental import pallas as pl
from jax.experimental.pallas import tpu as pltpu


# ----------------------------- tiling helpers -----------------------------

def _pick_row_tile(m, target=512):
    """Largest multiple-of-8 divisor of m that is <= target and (when possible) <= m//2,
    so row-tiled grids have >= 2 steps (megacore sharding on v7x)."""
    if m <= 8:
        return m
    cap = min(target, max(8, (m // 2) // 8 * 8))
    for tm in range(cap, 7, -8):
        if m % tm == 0:
            return tm
    return m  # fallback: one full block (block == full dim, so no (8,128) violation)


def _pick_seq_group(num_seqs, seq_len, *, target_rows=256):
    """Sequences per attention grid step: fill ~target_rows MXU rows per step while keeping
    >= 2 grid steps whenever num_seqs >= 2 (so both v7x TensorCores get work)."""
    best = 1
    for k in range(1, num_seqs + 1):
        if num_seqs % k:
            continue
        if k * seq_len > max(target_rows, seq_len):
            break
        if num_seqs // k >= 2:
            best = k
    return best


# ----------------------------- Embedding LayerNorm (no residual) -----------------------------

def _ln_kernel(x_ref, g_ref, b_ref, o_ref, *, eps):
    x = x_ref[...].astype(jnp.float32)
    mu = jnp.mean(x, axis=-1, keepdims=True)
    var = jnp.mean(jnp.square(x - mu), axis=-1, keepdims=True)
    o_ref[...] = ((x - mu) * jax.lax.rsqrt(var + eps) * g_ref[...]
                  + b_ref[...]).astype(o_ref.dtype)


def layernorm_bf16(x, gamma2d, beta2d, *, eps=1e-12, row_tile=512):
    """LayerNorm over the hidden axis, row-tiled; bf16 output for the next kernel."""
    # TODO(synk): could be fused into the first encoder-layer kernel to remove one more
    # activation round-trip; kept standalone for code clarity.
    M, H = x.shape
    tm = _pick_row_tile(M, row_tile)
    return pl.pallas_call(
        functools.partial(_ln_kernel, eps=eps),
        out_shape=jax.ShapeDtypeStruct((M, H), jnp.bfloat16),
        grid=(pl.cdiv(M, tm),),
        in_specs=[
            pl.BlockSpec((tm, H), lambda i: (i, 0)),
            pl.BlockSpec((1, H), lambda i: (0, 0)),
            pl.BlockSpec((1, H), lambda i: (0, 0)),
        ],
        out_specs=pl.BlockSpec((tm, H), lambda i: (i, 0)),
        compiler_params=pltpu.CompilerParams(dimension_semantics=("parallel",)),
    )(x, gamma2d, beta2d)


# ----------------------------- Fused encoder layer -----------------------------
# x(bf16) -> fused QKV -> per-head masked softmax attention (ctx slab in VMEM scratch)
#   -> out-proj -> +residual -> LN1 -> FFN up-proj -> GELU -> down-proj -> +residual -> LN2
#   -> out(bf16).   grid = (num_sequence_groups,), "parallel".

def _encoder_layer_kernel(x_ref, bias_ref, wqkv_ref, bqkv_ref, wo_ref, bo_ref,
                          ln1g_ref, ln1b_ref, w1_ref, b1_ref, w2_ref, b2_ref,
                          ln2g_ref, ln2b_ref, o_ref, ctx_ref, *,
                          num_heads, seq_len, eps):
    R, H = x_ref.shape                       # R = k * seq_len rows (k sequences per step)
    S = seq_len
    k = R // S
    hd = H // num_heads

    x_bf = x_ref[...]                        # (R, H) bf16
    x = x_bf.astype(jnp.float32)

    # ---- fused QKV projection (1/sqrt(hd) pre-folded into the Q columns of wqkv/bqkv) ----
    qkv = jnp.dot(x_bf, wqkv_ref[...], preferred_element_type=jnp.float32) + bqkv_ref[...]
    qkv_bf = qkv.astype(jnp.bfloat16)        # single bf16 cast of the whole (R, 3H) slab

    # Additive key-padding bias, broadcast ONCE (hoisted out of the head loop).
    bias = jnp.broadcast_to(bias_ref[...], (k, S, S))       # (k, S, S) f32

    # ---- per-head attention; context written lane-slab-wise into VMEM scratch ----
    # TODO(synk): for production maxseqlen >= 256 switch to a flash-style online-softmax
    # kernel with a KV grid axis instead of materializing (S, S) scores per head.
    for h in range(num_heads):               # static unroll over heads
        q_h = qkv_bf[:, h * hd:(h + 1) * hd].reshape(k, S, hd)
        k_h = qkv_bf[:, H + h * hd:H + (h + 1) * hd].reshape(k, S, hd)
        v_h = qkv_bf[:, 2 * H + h * hd:2 * H + (h + 1) * hd].reshape(k, S, hd)
        s = jnp.einsum('bqd,bkd->bqk', q_h, k_h,
                       preferred_element_type=jnp.float32) + bias        # (k, S, S)
        m = jnp.max(s, axis=-1, keepdims=True)
        p = jnp.exp(s - m)
        p = p * pl.reciprocal(jnp.sum(p, axis=-1, keepdims=True), approx=True)
        ctx_h = jnp.einsum('bqk,bkd->bqd', p.astype(jnp.bfloat16), v_h,
                           preferred_element_type=jnp.float32)            # (k, S, hd)
        ctx_ref[:, h * hd:(h + 1) * hd] = ctx_h.reshape(R, hd)

    # ---- output projection + residual + LN1 ----
    attn = jnp.dot(ctx_ref[...].astype(jnp.bfloat16), wo_ref[...],
                   preferred_element_type=jnp.float32) + bo_ref[...]
    y = attn + x
    mu = jnp.mean(y, axis=-1, keepdims=True)
    var = jnp.mean(jnp.square(y - mu), axis=-1, keepdims=True)
    y = (y - mu) * jax.lax.rsqrt(var + eps) * ln1g_ref[...] + ln1b_ref[...]

    # ---- FFN: up-proj + GELU + down-proj + residual + LN2 (all in VMEM) ----
    # TODO(synk): HF BERT/Electra default is exact erf GELU; tanh approx kept for robust
    # Mosaic lowering (matches gelu_new configs).
    h1 = jnp.dot(y.astype(jnp.bfloat16), w1_ref[...],
                 preferred_element_type=jnp.float32) + b1_ref[...]
    h1 = jax.nn.gelu(h1)
    h2 = jnp.dot(h1.astype(jnp.bfloat16), w2_ref[...],
                 preferred_element_type=jnp.float32) + b2_ref[...]
    z = h2 + y
    mu2 = jnp.mean(z, axis=-1, keepdims=True)
    var2 = jnp.mean(jnp.square(z - mu2), axis=-1, keepdims=True)
    o_ref[...] = ((z - mu2) * jax.lax.rsqrt(var2 + eps) * ln2g_ref[...]
                  + ln2b_ref[...]).astype(o_ref.dtype)


def encoder_layer(x2d, bias, layer, *, seq_len, num_heads, eps=1e-12):
    """x2d: (num_seqs*seq_len, H) bf16, bias: (num_seqs, 1, seq_len) f32 -> bf16 output."""
    M, H = x2d.shape
    B = M // seq_len
    k = _pick_seq_group(B, seq_len)          # sequences per grid step
    R = k * seq_len
    F = layer["w1"].shape[1]
    kernel = functools.partial(_encoder_layer_kernel, num_heads=num_heads,
                               seq_len=seq_len, eps=eps)
    # TODO(synk): at BERT-base sizes single-buffer the constant weight BlockSpecs
    # (pipeline_mode=pl.Buffered(1)) to halve weight VMEM; left at defaults here.
    return pl.pallas_call(
        kernel,
        out_shape=jax.ShapeDtypeStruct((M, H), jnp.bfloat16),
        grid=(B // k,),
        in_specs=[
            pl.BlockSpec((R, H), lambda b: (b, 0)),                 # x (bf16)
            pl.BlockSpec((k, 1, seq_len), lambda b: (b, 0, 0)),     # key bias
            pl.BlockSpec((H, 3 * H), lambda b: (0, 0)),             # wqkv (bf16, Q pre-scaled)
            pl.BlockSpec((1, 3 * H), lambda b: (0, 0)),             # bqkv
            pl.BlockSpec((H, H), lambda b: (0, 0)),                 # wo
            pl.BlockSpec((1, H), lambda b: (0, 0)),                 # bo
            pl.BlockSpec((1, H), lambda b: (0, 0)),                 # ln1 gamma
            pl.BlockSpec((1, H), lambda b: (0, 0)),                 # ln1 beta
            pl.BlockSpec((H, F), lambda b: (0, 0)),                 # w1
            pl.BlockSpec((1, F), lambda b: (0, 0)),                 # b1
            pl.BlockSpec((F, H), lambda b: (0, 0)),                 # w2
            pl.BlockSpec((1, H), lambda b: (0, 0)),                 # b2
            pl.BlockSpec((1, H), lambda b: (0, 0)),                 # ln2 gamma
            pl.BlockSpec((1, H), lambda b: (0, 0)),                 # ln2 beta
        ],
        out_specs=pl.BlockSpec((R, H), lambda b: (b, 0)),
        scratch_shapes=[pltpu.VMEM((R, H), jnp.float32)],           # per-head ctx slab
        compiler_params=pltpu.CompilerParams(
            dimension_semantics=("parallel",),
            vmem_limit_bytes=64 * 1024 * 1024),
    )(x2d, bias, layer["wqkv"], layer["bqkv"], layer["wo"], layer["bo"],
      layer["ln1_g"], layer["ln1_b"], layer["w1"], layer["b1"],
      layer["w2"], layer["b2"], layer["ln2_g"], layer["ln2_b"])


# ----------------------------- BERT forward (glue + kernels) -----------------------------

def bert_for_sequence_classification(params, input_ids, attention_mask, token_type_ids):
    """Small BERT encoder + ElectraRelevanceHead. Returns logits (B, num_labels)."""
    B, S = input_ids.shape
    H = params["tok_emb"].shape[1]
    nh = params["num_heads"]

    # Embedding gathers are glue (XLA handles gathers); LN is a Pallas kernel (bf16 out).
    x = (params["tok_emb"][input_ids]
         + params["pos_emb"][:S][None, :, :]
         + params["typ_emb"][token_type_ids]).astype(jnp.float32)        # (B, S, H)
    x = x.reshape(B * S, H)
    x = layernorm_bf16(x, params["emb_ln_g"], params["emb_ln_b"])        # (B*S, H) bf16

    # Additive attention bias from padding mask (BERT convention), per sequence.
    bias = ((1.0 - attention_mask.astype(jnp.float32)) * -10000.0)[:, None, :]   # (B, 1, S)

    for layer in params["layers"]:
        x = encoder_layer(x, bias, layer, seq_len=S, num_heads=nh)       # fused attn+FFN

    hidden = x.reshape(B, S, H)
    # ElectraRelevanceHead: take [CLS]; dropout is identity in eval; out_proj.
    # (B, 2) output is 2 lanes wide -> plain JAX, not worth a pallas_call.
    cls = hidden[:, 0, :].astype(jnp.float32)                            # (B, H)
    logits = cls @ params["w_out"] + params["b_out"]                     # (B, num_labels)
    return logits


def pt_bert_maxp_forward(params, doc_input, doc_mask, doc_seg, *,
                         num_passages, maxseqlen, aggregation="max"):
    """PTBERTMaxP_Class.forward in eval mode (== predict_step)."""
    batch_size = doc_input.shape[0]
    passage_position = (doc_mask * doc_seg).sum(axis=-1)                 # (BS, N_PSG)
    passage_mask = (passage_position > 5).astype(jnp.int32)

    di = doc_input.reshape(batch_size * num_passages, maxseqlen)
    dm = doc_mask.reshape(batch_size * num_passages, maxseqlen)
    ds = doc_seg.reshape(batch_size * num_passages, maxseqlen)

    logits = bert_for_sequence_classification(params, di, dm, ds)        # (BS*N_PSG, 2)
    passage_scores = logits[:, 1].reshape(batch_size, num_passages)

    if aggregation == "max":
        return passage_scores.max(axis=1)
    elif aggregation == "first":
        return passage_scores[:, 0]
    elif aggregation == "sum":
        return jnp.sum(passage_mask * passage_scores, axis=1)
    elif aggregation == "avg":
        # Matches the PyTorch reference: denominator is the mask sum over the whole batch.
        return jnp.sum(passage_mask * passage_scores, axis=1) / jnp.sum(passage_mask)
    raise ValueError("Unknown aggregation method: {}".format(aggregation))


# ----------------------------- Parameters -----------------------------

def init_params(key, *, vocab=96, hidden=128, num_layers=2, num_heads=4,
                ffn=256, max_pos=64, type_vocab=2, num_labels=2):
    """Deterministic synthetic weights mirroring the PyTorch module structure."""
    def nrm(k, shape):
        return jax.random.normal(k, shape, jnp.float32) * 0.02

    keys = iter(jax.random.split(key, 8 + num_layers * 12))
    params = {
        "num_heads": num_heads,
        "tok_emb": nrm(next(keys), (vocab, hidden)),
        "pos_emb": nrm(next(keys), (max_pos, hidden)),
        "typ_emb": nrm(next(keys), (type_vocab, hidden)),
        "emb_ln_g": jnp.ones((hidden,), jnp.float32),
        "emb_ln_b": jnp.zeros((hidden,), jnp.float32),
        "w_out": nrm(next(keys), (hidden, num_labels)),
        "b_out": jnp.zeros((num_labels,), jnp.float32),
        "layers": [],
    }
    for _ in range(num_layers):
        params["layers"].append({
            "wq": nrm(next(keys), (hidden, hidden)), "bq": jnp.zeros((hidden,), jnp.float32),
            "wk": nrm(next(keys), (hidden, hidden)), "bk": jnp.zeros((hidden,), jnp.float32),
            "wv": nrm(next(keys), (hidden, hidden)), "bv": jnp.zeros((hidden,), jnp.float32),
            "wo": nrm(next(keys), (hidden, hidden)), "bo": jnp.zeros((hidden,), jnp.float32),
            "ln1_g": jnp.ones((hidden,), jnp.float32), "ln1_b": jnp.zeros((hidden,), jnp.float32),
            "w1": nrm(next(keys), (hidden, ffn)), "b1": jnp.zeros((ffn,), jnp.float32),
            "w2": nrm(next(keys), (ffn, hidden)), "b2": jnp.zeros((hidden,), jnp.float32),
            "ln2_g": jnp.ones((hidden,), jnp.float32), "ln2_b": jnp.zeros((hidden,), jnp.float32),
        })
    return params


def prepare_params(params, *, num_heads=None):
    """Kernel-ready params: fused QKV with 1/sqrt(hd) folded into Q, bf16 matmul weights,
    2-D bias / LN rows.  Done once, outside the kernels."""
    nh = num_heads if num_heads is not None else params["num_heads"]
    H = params["tok_emb"].shape[1]
    scale = 1.0 / math.sqrt(H // nh)
    prepped = {
        "num_heads": nh,
        "tok_emb": params["tok_emb"],
        "pos_emb": params["pos_emb"],
        "typ_emb": params["typ_emb"],
        "emb_ln_g": params["emb_ln_g"].reshape(1, H),
        "emb_ln_b": params["emb_ln_b"].reshape(1, H),
        "w_out": params["w_out"],
        "b_out": params["b_out"],
        "layers": [],
    }
    for layer in params["layers"]:
        prepped["layers"].append({
            "wqkv": jnp.concatenate([layer["wq"] * scale, layer["wk"], layer["wv"]],
                                    axis=1).astype(jnp.bfloat16),          # (H, 3H)
            "bqkv": jnp.concatenate([layer["bq"] * scale, layer["bk"], layer["bv"]]
                                    ).reshape(1, 3 * H),                    # (1, 3H) f32
            "wo": layer["wo"].astype(jnp.bfloat16),
            "bo": layer["bo"].reshape(1, H),
            "ln1_g": layer["ln1_g"].reshape(1, H), "ln1_b": layer["ln1_b"].reshape(1, H),
            "w1": layer["w1"].astype(jnp.bfloat16),
            "b1": layer["b1"].reshape(1, -1),
            "w2": layer["w2"].astype(jnp.bfloat16),
            "b2": layer["b2"].reshape(1, H),
            "ln2_g": layer["ln2_g"].reshape(1, H), "ln2_b": layer["ln2_b"].reshape(1, H),
        })
    return prepped


# ----------------------------- Demo -----------------------------

if __name__ == "__main__":
    key = jax.random.PRNGKey(0)
    k_tok, k_par = jax.random.split(key)

    BS, N_PSG, SEQ = 2, 2, 16          # batch, passages per doc, max sequence length
    HIDDEN, HEADS, LAYERS, FFN = 128, 4, 2, 256   # lane-dense hidden (multiple of 128)
    VOCAB = 96

    # Deterministic token ids / attention mask / segment ids.
    pos = jnp.arange(SEQ)
    lengths = jnp.array([[16, 12], [16, 6]], dtype=jnp.int32)                 # (BS, N_PSG)
    doc_mask = (pos[None, None, :] < lengths[:, :, None]).astype(jnp.int32)   # (BS, N_PSG, SEQ)
    doc_seg = ((pos[None, None, :] >= 4)
               & (pos[None, None, :] < lengths[:, :, None])).astype(jnp.int32)
    doc_input = jax.random.randint(k_tok, (BS, N_PSG, SEQ), 3, VOCAB, dtype=jnp.int32)
    doc_input = doc_input.at[:, :, 0].set(1)           # [CLS]-like token
    doc_input = doc_input * doc_mask                   # zero out padding

    raw_params = init_params(k_par, vocab=VOCAB, hidden=HIDDEN, num_layers=LAYERS,
                             num_heads=HEADS, ffn=FFN, max_pos=SEQ,
                             type_vocab=2, num_labels=2)
    params = prepare_params(raw_params)

    out = pt_bert_maxp_forward(params, doc_input, doc_mask, doc_seg,
                               num_passages=N_PSG, maxseqlen=SEQ, aggregation="max")
    out = jax.block_until_ready(out)
    assert out.shape == (BS,) and out.dtype == jnp.float32
    print("KERNEL_OK")
</pallas_src>

<mosaic_0001>
module attributes {stable_mosaic.version = 11 : i64} {
  func.func @_ln_kernel(%arg0: i32, %arg1: memref<32x128xf32, #tpu.memory_space<vmem>>, %arg2: memref<1x128xf32, #tpu.memory_space<vmem>>, %arg3: memref<1x128xf32, #tpu.memory_space<vmem>>, %arg4: memref<32x128xbf16, #tpu.memory_space<vmem>>) attributes {dimension_semantics = [#tpu.dimension_semantics<parallel>], iteration_bounds = array<i64: 2>, scalar_prefetch = 0 : i64, scratch_operands = 0 : i64, tpu.core_type = #tpu.core_type<tc>, window_params = [{transform_indices = @transform_0, window_bounds = array<i64: 32, 128>}, {pipeline_mode = #tpu.pipeline_mode<synchronous>, transform_indices = @transform_1, window_bounds = array<i64: 1, 128>}, {pipeline_mode = #tpu.pipeline_mode<synchronous>, transform_indices = @transform_2, window_bounds = array<i64: 1, 128>}, {transform_indices = @transform_3, window_bounds = array<i64: 32, 128>}]} {
    %c0 = arith.constant 0 : index
    %c0_0 = arith.constant 0 : index
    %0 = vector.load %arg1[%c0, %c0_0] : memref<32x128xf32, #tpu.memory_space<vmem>>, vector<32x128xf32>
    %cst = arith.constant dense<0.000000e+00> : vector<32xf32>
    %1 = vector.multi_reduction <add>, %0, %cst [1] : vector<32x128xf32> to vector<32xf32>
    %2 = vector.shape_cast %1 : vector<32xf32> to vector<32x1xf32>
    %cst_1 = arith.constant 1.280000e+02 : f32
    %3 = vector.broadcast %cst_1 : f32 to vector<32x1xf32>
    %4 = arith.divf %2, %3 : vector<32x1xf32>
    %5 = vector.broadcast %4 : vector<32x1xf32> to vector<32x128xf32>
    %6 = arith.subf %0, %5 : vector<32x128xf32>
    %7 = arith.mulf %6, %6 : vector<32x128xf32>
    %cst_2 = arith.constant dense<0.000000e+00> : vector<32xf32>
    %8 = vector.multi_reduction <add>, %7, %cst_2 [1] : vector<32x128xf32> to vector<32xf32>
    %9 = vector.shape_cast %8 : vector<32xf32> to vector<32x1xf32>
    %cst_3 = arith.constant 1.280000e+02 : f32
    %10 = vector.broadcast %cst_3 : f32 to vector<32x1xf32>
    %11 = arith.divf %9, %10 : vector<32x1xf32>
    %12 = vector.broadcast %4 : vector<32x1xf32> to vector<32x128xf32>
    %13 = arith.subf %0, %12 : vector<32x128xf32>
    %cst_4 = arith.constant 9.99999996E-13 : f32
    %14 = vector.broadcast %cst_4 : f32 to vector<32x1xf32>
    %15 = arith.addf %11, %14 : vector<32x1xf32>
    %16 = math.rsqrt %15 : vector<32x1xf32>
    %17 = vector.broadcast %16 : vector<32x1xf32> to vector<32x128xf32>
    %18 = arith.mulf %13, %17 : vector<32x128xf32>
    %c0_5 = arith.constant 0 : index
    %c0_6 = arith.constant 0 : index
    %19 = vector.load %arg2[%c0_5, %c0_6] : memref<1x128xf32, #tpu.memory_space<vmem>>, vector<1x128xf32>
    %20 = vector.broadcast %19 : vector<1x128xf32> to vector<32x128xf32>
    %21 = arith.mulf %18, %20 : vector<32x128xf32>
    %c0_7 = arith.constant 0 : index
    %c0_8 = arith.constant 0 : index
    %22 = vector.load %arg3[%c0_7, %c0_8] : memref<1x128xf32, #tpu.memory_space<vmem>>, vector<1x128xf32>
    %23 = vector.broadcast %22 : vector<1x128xf32> to vector<32x128xf32>
    %24 = arith.addf %21, %23 : vector<32x128xf32>
    %25 = arith.truncf %24 : vector<32x128xf32> to vector<32x128xbf16>
    %c0_9 = arith.constant 0 : index
    %c0_10 = arith.constant 0 : index
    %26 = vector.load %arg4[%c0_9, %c0_10] : memref<32x128xbf16, #tpu.memory_space<vmem>>, vector<32x128xbf16>
    tpu.vector_store %arg4[%c0_9, %c0_10], %25 {strides = array<i32>} : memref<32x128xbf16, #tpu.memory_space<vmem>>, vector<32x128xbf16>,
    return
  }
  func.func @transform_0(%arg0: i32) -> (i32, i32) {
    %c0_i32 = arith.constant 0 : i32
    %c0_i32_0 = arith.constant 0 : i32
    return %arg0, %c0_i32 : i32, i32
  }
  func.func @transform_1(%arg0: i32) -> (i32, i32) {
    %c0_i32 = arith.constant 0 : i32
    %c0_i32_0 = arith.constant 0 : i32
    %c0_i32_1 = arith.constant 0 : i32
    return %c0_i32, %c0_i32_0 : i32, i32
  }
  func.func @transform_2(%arg0: i32) -> (i32, i32) {
    %c0_i32 = arith.constant 0 : i32
    %c0_i32_0 = arith.constant 0 : i32
    %c0_i32_1 = arith.constant 0 : i32
    return %c0_i32, %c0_i32_0 : i32, i32
  }
  func.func @transform_3(%arg0: i32) -> (i32, i32) {
    %c0_i32 = arith.constant 0 : i32
    %c0_i32_0 = arith.constant 0 : i32
    return %arg0, %c0_i32 : i32, i32
  }
}

</mosaic_0001>

<bundles_post_ra>
// kernel: tpu_custom_call.1
= control target key start
LH: loop header
LB: loop body
LE: loop exit
PB: predicated region body
PF: predicated region fallthrough
CT: control target
= control target key end

     0   :  { %8 = vsyncpa [#allocation3], 0  ;;  %s745_s0 = inlined_call_operand.hbm [shape: f32[64,128], index: 0, kind: input, shape index: {}]   ;;  %s746_s1 = inlined_call_operand.vmem [shape: f32[1,128], index: 1, kind: input, shape index: {}]   ;;  %s747_s2 = inlined_call_operand.vmem [shape: f32[1,128], index: 2, kind: input, shape index: {}]   ;;  %s748_s3 = inlined_call_operand.hbm [shape: bf16[64,128], index: 3, kind: output, shape index: {}]  }
   0x1   :  { %10 = vsyncpa [#allocation3 + $0x1], 0 }
   0x2   :  { %11 = vsyncpa [#allocation4], 0 }
   0x3   :  { %13 = vsyncpa [#allocation4 + $0x1], 0  ;;  %s584_s12 = smov 0   ;;  %s586_s13 = smov 0  }
   0x4   :  { %s588_s14 = smov 0   ;;  %s590_s15 = smov 0  }
   0x5 LB: > { %s605_s16 = sadd.s32 4294967295, %s556_s15   ;;  %s369_s17 = sadd.s32 4294967294, %s556_s15   ;;  %s556_s15 = sphi %s590_s15, %s763_s15   ;;  %s552_s14 = sphi %s588_s14, %s762_s14   ;;  %s548_s13 = sphi %s586_s13, %s761_s13   ;;  %s544_s12 = sphi %s584_s12, %s760_s12  }
   0x6   : > { %s609_s18 = sadd.s32 1, %s556_s15   ;;  %s26_s19 = sadd.s32 1, %s552_s14 }
   0x7   : > { %s23_s20 = ssub.s32 %s556_s15, %s609_s18  ;;  %p33_p0 = scmp.ne.s32.totalorder %s552_s14, %s548_s13 }
   0x8   : > { %p24_p1 = scmp.eq.s32.totalorder %s23_s20, 0  ;;  %p34_p2 = scmp.eq.s32.totalorder %s556_s15, 0 }
   0x9   : > { %p39_p3 = scmp.ne.s32.totalorder %s548_s13, %s544_s12  ;;  %p40_p4 = scmp.eq.s32.totalorder %s605_s16, 0 }
   0xa   : > { %s621_s21 = scalar_select %p24_p1, %s552_s14, %s26_s19  }
   0xb   : > { %p623_p5 = por %p34_p2, %p33_p0  ;;  %p627_p6 = por %p40_p4, %p39_p3 }
   0xc   : > { %p105_p7 = scmp.eq.s32.totalorder %s605_s16, 1  ;;  %p111_p8 = scmp.eq.s32.totalorder %s369_s17, 1 }
   0xd   : > { %s752_s23 = scalar_select %p627_p6, 1, 0 }
   0xe   : > { %p418_p10 = scmp.lt.s32.totalorder %s556_s15, 2  ;;  %p634_p11 = por %p105_p7, %p33_p0 }
   0xf   : > { %p638_p12 = por %p111_p8, %p39_p3  ;;  %s137_s26 = sand.u32 1, %s552_s14  }
  0x10   : > { %s753_s24 = scalar_select %p634_p11, 1, 0 }
  0x11   : > { %s754_s25 = scalar_select %p638_p12, 1, 0 }
  0x12   : > { %s389_s27 = sshll.u32 %s556_s15, 9  ;;  %s372_s28 = sshll.u32 %s137_s26, 5 }
  0x13   : > { %s647_s4 = scalar_lea.hbm %s745_s0, %s389_s27  ;;  %s141_s5 = scalar_lea.vmem [#allocation2], %s372_s28 }
  0x14   : > { %s148_s6 = sshll.u32 %s141_s5, 4  ;;  %p651_p13 = pnand %p418_p10, %p623_p5  ;;  %s655_s6 = int_to_ptr.vmem [resolvable:$true] %s148_s6 }
  0x15   : > { %s657_s8 = scalar_lea.sflag [#allocation3], %s137_s26  ;;  %s464_s9 = scalar_lea.hbm %s647_s4, 512 }
  0x16   : > { %p465_p0 = scmp.ne.s32.totalorder %s647_s4, %s464_s9  ;;  %p466_p1 = pneg %p651_p13 }
  0x17   : > { %s469_s17 = scalar_lea.hbm %s745_s0, 1024  ;;  %p470_p4 = scmp.lt.s32.totalorder %s647_s4, %s745_s0 }
  0x18   : > { %p467_p2 = pnand %p466_p1, %p465_p0  ;;  %p471_p5 = scmp.lt.s32.totalorder %s469_s17, %s464_s9 }
  0x1a   : > { %p468_p3 = pneg %p467_p2  ;;  %p472_p7 = por %p471_p5, %p470_p4 }
  0x1c   : > { %p473_p8 = pnand %p472_p7, %p468_p3 }
  0x1e   : > { %476 = shalt.err (!%p473_p8)
}
  0x1f   : > { %s477_s22 = scalar_lea.vmem %s655_s6, 512  ;;  %s558_s26 = smov [#allocation2]  }
  0x20   : > { %p478_p10 = scmp.ne.s32.totalorder %s655_s6, %s477_s22  ;;  %s482_s27 = sshll.u32 %s558_s26, 4  ;;  %s483_s27 = int_to_ptr.vmem [resolvable:$false] %s482_s27 }
  0x21   : > { %s484_s28 = scalar_lea.vmem %s483_s27, 1024  ;;  %p485_p2 = scmp.lt.s32.totalorder %s655_s6, %s483_s27 }
  0x22   : > { %p480_p9 = pnand %p478_p10, %p466_p1  ;;  %p486_p12 = scmp.lt.s32.totalorder %s484_s28, %s477_s22 }
  0x24   : > { %p481_p0 = pneg %p480_p9  ;;  %p487_p11 = por %p486_p12, %p485_p2 }
  0x26   : > { %p488_p6 = pnand %p487_p11, %p481_p0 }
  0x28   : > { %491 = shalt.err (!%p488_p6)
}
  0x29   : > { %s559_s29 = smov 128   ;;  %s560_s30 = smov 8  }
  0x2a   : > { %413 = dma.hbm_to_vmem [thread:$0]  (!%p651_p13), %s647_s4, 512, %s655_s6, %s657_s8, %s559_s29, %s559_s29, %s560_s30  }
  0x2b   : > { %p375_p9 = scmp.ge.s32.totalorder %s556_s15, 1  ;;  %p156_p1 = scmp.lt.s32.totalorder %s556_s15, 3 }
  0x2d   : > { %p157_p3 = pnand %p375_p9, %p156_p1 }
  0x2e   : > { %s681_s5 = sand.u32 (!%p157_p3), 1, %s548_s13   ;;  %p756_p6 = scmp.ne.s32.totalorder (!%p157_p3), %s752_s23, 0 }
  0x2f   : > { %160 = sbr.rel (%p157_p3) target bundleno = 384 (0x180), region = 32  ;;  %s376_s9 = sshll.u32 (!%p157_p3), %s681_s5, 5 }
  0x30   : > { %s163_s10 = scalar_lea.sflag (!%p157_p3), [#allocation3], %s681_s5  ;;  %s166_s11 = scalar_lea.vmem (!%p157_p3), [#allocation2], %s376_s9 }
  0x34   : > { %535 = dma.done.wait (%p756_p6), %s163_s10, 512  }
  0x35   : > { %537 = vsyncadd (%p756_p6), %s163_s10, 4294966784  ;;  %v191_v0 = vld [vmem:[%s166_s11] sm:$0xff]  ;;  %v193_v1 = vld [vmem:[%s166_s11 + $0x10] sm:$0xff]  ;;  %s377_s8 = sshll.u32 %s681_s5, 4  ;;  %s394_s17 = sshll.u32 %s605_s16, 8 }
  0x36   : > { %195 = vadd.xlane.f32.xlu0 %v191_v0  ;;  %199 = vadd.xlane.f32.xlu1 %v193_v1  ;;  %v192_v2 = vld [vmem:[%s166_s11 + $0x8] sm:$0xff]  ;;  %v194_v3 = vld [vmem:[%s166_s11 + $0x18] sm:$0xff]  ;;  %v378_v34 = vld [vmem:[%s746_s1] ss:$0 sm:$0xff]  ;;  %s188_s19 = scalar_lea.vmem [#allocation5], %s377_s8  ;;  %s700_s27 = scalar_lea.hbm %s748_s3, %s394_s17 }
  0x37   : > { %v379_v39 = vld [vmem:[%s747_s2] ss:$0 sm:$0xff]  ;;  %s296_s20 = sshll.u32 %s188_s19, 4  ;;  %s283_s28 = scalar_lea.sflag [#allocation4], %s681_s5  ;;  %s702_s20 = int_to_ptr.vmem [resolvable:$true] %s296_s20 }
  0x38   : > { %s492_s29 = scalar_lea.vmem %s702_s20, 256  ;;  %p757_p12 = scmp.ne.s32.totalorder %s753_s24, 0 }
  0x39   : > { %p493_p11 = scmp.ne.s32.totalorder %s702_s20, %s492_s29  ;;  %s561_s16 = smov [#allocation5]  }
  0x3a   : > { %197 = vadd.xlane.f32.xlu0 %v192_v2  ;;  %201 = vadd.xlane.f32.xlu1 %v194_v3  ;;  %s496_s30 = sshll.u32 %s561_s16, 4  ;;  %s497_s30 = int_to_ptr.vmem [resolvable:$false] %s496_s30 }
  0x3b   : > { %p494_p13 = pnand %p493_p11, %p757_p12  ;;  %s498_s9 = scalar_lea.vmem %s497_s30, 512 }
  0x3c   : > { %p499_p5 = scmp.lt.s32.totalorder %s702_s20, %s497_s30  ;;  %p500_p7 = scmp.lt.s32.totalorder %s498_s9, %s492_s29 }
  0x3d   : > { %p495_p4 = pneg %p494_p13 }
  0x3e   : > { %p501_p8 = por %p500_p7, %p499_p5 }
  0x40   : > { %p502_p10 = pnand %p501_p8, %p495_p4 }
  0xbf   : > { %v196_v4 = vpop.xlane.xlu0 %195  ;;  %v200_v5 = vpop.xlane.xlu1 %199 }
  0xc0   : > { %v204_v6 = vmul.f32 0.0078125, %v196_v4  ;;  %v206_v7 = vmul.f32 0.0078125, %v200_v5 }
  0xc2   : > { %v208_v8 = vsub.f32 %v191_v0, %v204_v6  ;;  %v210_v9 = vsub.f32 %v193_v1, %v206_v7 }
  0xc3   : > { %v198_v10 = vpop.xlane.xlu0 %197  ;;  %v202_v11 = vpop.xlane.xlu1 %201 }
  0xc4   : > { %v205_v12 = vmul.f32 0.0078125, %v198_v10  ;;  %v212_v13 = vmul.f32 %v208_v8, %v208_v8  ;;  %v207_v14 = vmul.f32 0.0078125, %v202_v11  ;;  %v214_v17 = vmul.f32 %v210_v9, %v210_v9 }
  0xc6   : > { %v209_v15 = vsub.f32 %v192_v2, %v205_v12  ;;  %216 = vadd.xlane.f32.xlu0 %v212_v13  ;;  %v211_v16 = vsub.f32 %v194_v3, %v207_v14 }
  0xc8   : > { %v213_v18 = vmul.f32 %v209_v15, %v209_v15  ;;  %v215_v19 = vmul.f32 %v211_v16, %v211_v16 }
  0xca   : > { %220 = vadd.xlane.f32.xlu0 %v214_v17  ;;  %218 = vadd.xlane.f32.xlu1 %v213_v18 }
  0xce   : > { %222 = vadd.xlane.f32.xlu1 %v215_v19 }
 0x14f   : > { %v217_v20 = vpop.xlane.xlu0 %216 }
 0x150   : > { %v224_v21 = vmul.f32 0.0078125, %v217_v20 }
 0x152   : > { %v228_v22 = vadd.f32 1e-12, %v224_v21 }
 0x153   : > { %v219_v23 = vpop.xlane.xlu1 %218  ;;  %v221_v24 = vpop.xlane.xlu0 %220 }
 0x154   : > { %456 = vrsqrt.f32 %v228_v22  ;;  %v225_v25 = vmul.f32 0.0078125, %v219_v23  ;;  %v226_v26 = vmul.f32 0.0078125, %v221_v24 }
 0x156   : > { %v229_v27 = vadd.f32 1e-12, %v225_v25  ;;  %v230_v28 = vadd.f32 1e-12, %v226_v26 }
 0x157   : > { %v223_v29 = vpop.xlane.xlu1 %222 }
 0x158   : > { %458 = vrsqrt.f32 %v229_v27  ;;  %v227_v30 = vmul.f32 0.0078125, %v223_v29 }
 0x159   : > { %460 = vrsqrt.f32 %v230_v28 }
 0x15a   : > { %v231_v31 = vadd.f32 1e-12, %v227_v30 }
 0x15c   : > { %462 = vrsqrt.f32 %v231_v31 }
 0x161   : > { %v457_v32 = vpop.eup %456 }
 0x162   : > { %v236_v33 = vmul.f32 %v457_v32, %v208_v8 }
 0x164   : > { %v247_v37 = vmul.f32 %v378_v34, %v236_v33 }
 0x165   : > { %v459_v35 = vpop.eup %458 }
 0x166   : > { %v461_v36 = vpop.eup %460  ;;  %v237_v38 = vmul.f32 %v459_v35, %v209_v15  ;;  %v258_v43 = vadd.f32 %v379_v39, %v247_v37 }
 0x167   : > { %v238_v40 = vmul.f32 %v461_v36, %v210_v9 }
 0x168   : > { %v248_v41 = vmul.f32 %v378_v34, %v237_v38 }
 0x169   : > { %v463_v42 = vpop.eup %462  ;;  %v249_v45 = vmul.f32 %v378_v34, %v238_v40 }
 0x16a   : > { %v259_v44 = vadd.f32 %v379_v39, %v248_v41  ;;  %v239_v46 = vmul.f32 %v463_v42, %v211_v16 }
 0x16b   : > { %v260_v49 = vadd.f32 %v379_v39, %v249_v45 }
 0x16c   : > { %v250_v47 = vmul.f32 %v378_v34, %v239_v46  ;;  %v398_v48 = vpack.c.bf16 %v259_v44, %v258_v43 }
 0x16e   : > { %v261_v50 = vadd.f32 %v379_v39, %v250_v47  ;;  %399 = vst [vmem:[%s188_s19] sm:$0xff] %v398_v48  }
 0x170   : > { %v403_v51 = vpack.c.bf16 %v261_v50, %v260_v49 }
 0x172   : > { %405 = vst [vmem:[%s188_s19 + $0x8] sm:$0xff] %v403_v51  }
 0x173   : > { %505 = shalt.err (!%p502_p10)
}
 0x174   : > { %s506_s10 = scalar_lea.hbm %s700_s27, 256  ;;  %s510_s4 = scalar_lea.hbm %s748_s3, 512 }
 0x175   : > { %p507_p0 = scmp.ne.s32.totalorder %s700_s27, %s506_s10  ;;  %p511_p1 = scmp.lt.s32.totalorder %s700_s27, %s748_s3 }
 0x176   : > { %p512_p3 = scmp.lt.s32.totalorder %s510_s4, %s506_s10 }
 0x177   : > { %p508_p2 = pnand %p507_p0, %p757_p12 }
 0x178   : > { %p513_p6 = por %p512_p3, %p511_p1 }
 0x179   : > { %p509_p9 = pneg %p508_p2 }
 0x17b   : > { %p514_p11 = pnand %p513_p6, %p509_p9 }
 0x17d   : > { %517 = shalt.err (!%p514_p11)
}
 0x17e   : > { %s562_s8 = smov 64   ;;  %s563_s17 = smov 4  }
 0x17f   : > { %408 = dma.vmem_to_hbm [thread:$0]  (%p757_p12), %s702_s20, 256, %s700_s27, %s283_s28, %s562_s8, %s562_s8, %s563_s17  }
 0x180 PF: > { %s311_s19 = sand.u32 1, %s544_s12   ;;  %p758_p13 = scmp.ne.s32.totalorder %s754_s25, 0 }
 0x181   : > { %p759_p4 = scmp.ge.s32.totalorder %s556_s15, 2  ;;  %s312_s22 = scalar_lea.sflag [#allocation4], %s311_s19 }
 0x183   : > { %p415_p5 = pnand %p759_p4, %p758_p13 }
 0x185   : > { %p416_p7 = pneg %p415_p5 }
 0x187   : > { %539 = dma.done.wait (%p416_p7), %s312_s22, 256  }
 0x188   : > { %541 = vsyncadd (%p416_p7), %s312_s22, 4294967040  ;;  %p16_p8 = scmp.ge.s32.totalorder %s609_s18, 4   ;;  %s760_s12 = smov %s548_s13 }
 0x189   : > { %s761_s13 = smov %s552_s14  ;;  %s762_s14 = smov %s621_s21 }
 0x18a   : > { %s763_s15 = smov %s609_s18  ;;  %18 = sbr.rel (!%p16_p8) target bundleno = 5 (0x5), region = 77 }
 0x18f   :  { %317 = vsyncpa [#allocation3], 1 }
 0x190   :  { %319 = vsyncpa [#allocation3 + $0x1], 1 }
 0x191   :  { %320 = vsyncpa [#allocation4], 1 }
 0x192   :  { %322 = vsyncpa [#allocation4 + $0x1], 1 }

</bundles_post_ra>
